<compile_context>
chip_gen: v7x
topology: tpu7x:2x2x1
jax: 0.10.0
libtpu: 0.0.40
codegen_flags: <defaults>
</compile_context>

<pallas_src>
import jax
import jax.numpy as jnp
from jax.experimental import pallas as pl
from jax.experimental.pallas import tpu as pltpu


def _round_up(v, m):
    return ((v + m - 1) // m) * m


def _auto_bf16_epilogue():
    # bf16 VPU exists on v6e/v7x but NOT v5e; default to f32 epilogue if unknown.
    try:
        kind = jax.devices()[0].device_kind.lower()
    except Exception:
        return False
    return ("v6" in kind) or ("v7" in kind)


def _make_kernel(*, tb, bf16_epilogue, lane_dense):
    def kernel(x_ref, w1_ref, b1_ref, w2_ref, b2_ref, w3_ref, b3_ref, o_ref):
        x = x_ref[...].astype(jnp.bfloat16)                              # (tb, 8)

        # fc1: bf16 MXU matmul, f32 accumulate.
        # TODO(synk): if a bundle dump shows the vmatmul slot binding, move this K=8
        # layer to VPU broadcast-MACs (review opt #6); kept on MXU for robustness.
        h1 = jnp.dot(x, w1_ref[...], preferred_element_type=jnp.float32)
        if bf16_epilogue:        # v6e/v7x: bf16 VPU halves epilogue vreg traffic
            h1 = jnp.maximum(h1.astype(jnp.bfloat16)
                             + b1_ref[...].astype(jnp.bfloat16), 0.0)
        else:                    # v5e: no bf16 VPU -> f32 epilogue, cast for next dot
            h1 = jnp.maximum(h1 + b1_ref[...], 0.0).astype(jnp.bfloat16)

        # dropout(p=0.4): inference mode => identity.
        # TODO(synk): training-mode dropout would mask with pltpu.prng_random_bits.

        # fc2
        h2 = jnp.dot(h1, w2_ref[...], preferred_element_type=jnp.float32)
        if bf16_epilogue:
            h2 = jnp.maximum(h2.astype(jnp.bfloat16)
                             + b2_ref[...].astype(jnp.bfloat16), 0.0)
        else:
            h2 = jnp.maximum(h2 + b2_ref[...], 0.0).astype(jnp.bfloat16)

        # fc3 + softmax(dim=1), f32 epilogue for numerics.
        logits = (jnp.dot(h2, w3_ref[...], preferred_element_type=jnp.float32)
                  + b3_ref[...])                                         # (tb, 4)
        m = jnp.max(logits, axis=-1, keepdims=True)
        e = jnp.exp(logits - m)
        denom = jnp.sum(e, axis=-1, keepdims=True)
        # Exact reciprocal (EUP slot has slack); approx=True broke row normalization.
        p = e * pl.reciprocal(denom, approx=False)                       # (tb, 4) f32

        if lane_dense:
            # (tb,4) f32 row-major == (tb//32,128): unmasked lane-dense stores.
            o_ref[...] = p.reshape(tb // 32, 128)
        else:
            o_ref[...] = p

    return kernel


def _forward(x_p, params, *, tb, lane_dense, bf16_epilogue):
    w1, b1, w2, b2, w3, b3 = params
    Bp = x_p.shape[0]
    steps = Bp // tb
    kernel = _make_kernel(tb=tb, bf16_epilogue=bf16_epilogue, lane_dense=lane_dense)

    def const(a):  # fetched once, VMEM-resident across grid steps
        return pl.BlockSpec(a.shape, lambda i: (0, 0))

    if lane_dense:
        out_shape = jax.ShapeDtypeStruct((Bp // 32, 128), jnp.float32)
        out_spec = pl.BlockSpec((tb // 32, 128), lambda i: (i, 0))
    else:
        out_shape = jax.ShapeDtypeStruct((Bp, 4), jnp.float32)
        out_spec = pl.BlockSpec((tb, 4), lambda i: (i, 0))

    weight_bytes = sum(int(a.size) * a.dtype.itemsize for a in params)
    cost = pl.CostEstimate(
        flops=2 * Bp * (8 * 256 + 256 * 128 + 128 * 4),
        transcendentals=5 * Bp,                       # exp (x4) + reciprocal per row
        bytes_accessed=Bp * 8 * 4 + Bp * 4 * 4 + weight_bytes,
    )

    out = pl.pallas_call(
        kernel,
        out_shape=out_shape,
        grid=(steps,),
        in_specs=[
            pl.BlockSpec((tb, 8), lambda i: (i, 0)),          # x tile, pipelined
            const(w1), const(b1), const(w2), const(b2), const(w3), const(b3),
        ],
        out_specs=out_spec,
        compiler_params=pltpu.CompilerParams(
            dimension_semantics=("parallel",),                 # megacore split on v7x
            vmem_limit_bytes=32 * 1024 * 1024,                 # headroom over v5e's 16MiB
        ),
        cost_estimate=cost,
    )(x_p, w1, b1, w2, b2, w3, b3)

    if lane_dense:
        out = out.reshape(Bp, 4)                               # contiguous: free reshape
    return out


_LANE_DENSE_OK = True  # flipped off once if the in-kernel repack fails to lower


def emotion_predictor(x, params, *, block_b=2048, bf16_epilogue=None):
    """x: (B, 8) f32. params: bf16 weights stored (in,out) + f32 biases (1,out)."""
    global _LANE_DENSE_OK
    B = x.shape[0]
    if bf16_epilogue is None:
        bf16_epilogue = _auto_bf16_epilogue()

    # Batch-tile selection: large tiles amortize the ~0.35us/grid-step overhead; keep
    # >=2 (even) steps when possible so both v7x TensorCores get balanced work.  For
    # large batches align tiles to 256 rows so the lane-dense output block stays
    # (8,128)-aligned (small padding waste is cheap — the kernel is overhead-bound).
    align = 256 if B >= 512 else 8
    tb = min(block_b, max(align, _round_up(pl.cdiv(B, 2), align)))
    steps = pl.cdiv(B, tb)
    if steps > 2 and steps % 2:                                # even step count
        steps += 1
        tb = max(align, _round_up(pl.cdiv(B, steps), align))
        steps = pl.cdiv(B, tb)
    Bp = steps * tb

    # Pad to a whole number of tiles: no uninitialized VMEM rows inside the kernel.
    x_p = x if Bp == B else jnp.pad(x, ((0, Bp - B), (0, 0)))

    lane_dense_ok_shape = (tb % 256 == 0) or (steps == 1 and tb % 32 == 0)
    if lane_dense_ok_shape and _LANE_DENSE_OK:
        try:
            out = _forward(x_p, params, tb=tb, lane_dense=True,
                           bf16_epilogue=bf16_epilogue)
            return out[:B]
        except Exception:
            # Mosaic couldn't lower the (tb,4)->(tb//32,128) repack on this backend;
            # fall back (once) to the plain masked (tb,4) store.
            _LANE_DENSE_OK = False
    out = _forward(x_p, params, tb=tb, lane_dense=False, bf16_epilogue=bf16_epilogue)
    return out[:B]


def init_params(key):
    # Deterministic synthetic init (Kaiming-uniform-ish scale), weights pre-transposed
    # to (in,out) for x @ W.  Weights bf16 for the MXU; biases stay f32.
    k1, k2, k3, k4, k5, k6 = jax.random.split(key, 6)

    def lin(kw, kb, fan_in, fan_out):
        bound = 1.0 / float(fan_in) ** 0.5
        w = jax.random.uniform(kw, (fan_in, fan_out), jnp.float32, -bound, bound)
        b = jax.random.uniform(kb, (1, fan_out), jnp.float32, -bound, bound)
        return w.astype(jnp.bfloat16), b

    w1, b1 = lin(k1, k2, 8, 256)
    w2, b2 = lin(k3, k4, 256, 128)
    w3, b3 = lin(k5, k6, 128, 4)
    return (w1, b1, w2, b2, w3, b3)


def reference(x, params, *, bf16_epilogue):
    # Plain-JAX reference mirroring the kernel's mixed-precision formulation
    # (same semantics as the PyTorch module in eval mode).
    w1, b1, w2, b2, w3, b3 = params

    def layer(h, w, b):
        acc = jnp.dot(h.astype(jnp.bfloat16), w, preferred_element_type=jnp.float32)
        if bf16_epilogue:
            return jnp.maximum(acc.astype(jnp.bfloat16) + b.astype(jnp.bfloat16), 0.0)
        return jnp.maximum(acc + b, 0.0).astype(jnp.bfloat16)

    h = layer(x, w1, b1)
    h = layer(h, w2, b2)
    logits = jnp.dot(h.astype(jnp.bfloat16), w3,
                     preferred_element_type=jnp.float32) + b3
    return jax.nn.softmax(logits, axis=1)


if __name__ == "__main__":
    key = jax.random.PRNGKey(0)
    kx, kp = jax.random.split(key)
    params = init_params(kp)
    bf16_ep = _auto_bf16_epilogue()

    # Small single-block case, a ragged (padded) case, and a multi-block case that
    # exercises pipelining, megacore split and the lane-dense output path.
    for batch in (8, 100, 1024):
        x = jax.random.normal(jax.random.fold_in(kx, batch), (batch, 8),
                              dtype=jnp.float32)
        out = jax.block_until_ready(
            emotion_predictor(x, params, bf16_epilogue=bf16_ep))
        ref = reference(x, params, bf16_epilogue=bf16_ep)
        assert out.shape == (batch, 4)
        assert bool(jnp.allclose(out, ref, atol=3e-3, rtol=3e-3)), f"mismatch B={batch}"
        assert bool(jnp.allclose(jnp.sum(out, axis=1), 1.0, atol=1e-4)), \
            f"rows not normalized B={batch}"

    print("KERNEL_OK")
</pallas_src>

<mosaic_0001>
module attributes {stable_mosaic.version = 11 : i64} {
  func.func @kernel(%arg0: i32, %arg1: memref<8x8xf32, #tpu.memory_space<vmem>>, %arg2: memref<8x256xbf16, #tpu.memory_space<vmem>>, %arg3: memref<1x256xf32, #tpu.memory_space<vmem>>, %arg4: memref<256x128xbf16, #tpu.memory_space<vmem>>, %arg5: memref<1x128xf32, #tpu.memory_space<vmem>>, %arg6: memref<128x4xbf16, #tpu.memory_space<vmem>>, %arg7: memref<1x4xf32, #tpu.memory_space<vmem>>, %arg8: memref<8x4xf32, #tpu.memory_space<vmem>>) attributes {dimension_semantics = [#tpu.dimension_semantics<parallel>], iteration_bounds = array<i64: 1>, scalar_prefetch = 0 : i64, scratch_operands = 0 : i64, tpu.core_type = #tpu.core_type<tc>, window_params = [{transform_indices = @transform_0, window_bounds = array<i64: 8, 8>}, {pipeline_mode = #tpu.pipeline_mode<synchronous>, transform_indices = @transform_1, window_bounds = array<i64: 8, 256>}, {pipeline_mode = #tpu.pipeline_mode<synchronous>, transform_indices = @transform_2, window_bounds = array<i64: 1, 256>}, {pipeline_mode = #tpu.pipeline_mode<synchronous>, transform_indices = @transform_3, window_bounds = array<i64: 256, 128>}, {pipeline_mode = #tpu.pipeline_mode<synchronous>, transform_indices = @transform_4, window_bounds = array<i64: 1, 128>}, {pipeline_mode = #tpu.pipeline_mode<synchronous>, transform_indices = @transform_5, window_bounds = array<i64: 128, 4>}, {pipeline_mode = #tpu.pipeline_mode<synchronous>, transform_indices = @transform_6, window_bounds = array<i64: 1, 4>}, {transform_indices = @transform_7, window_bounds = array<i64: 8, 4>}]} {
    %c0 = arith.constant 0 : index
    %c0_0 = arith.constant 0 : index
    %0 = vector.load %arg1[%c0, %c0_0] : memref<8x8xf32, #tpu.memory_space<vmem>>, vector<8x8xf32>
    %1 = arith.truncf %0 : vector<8x8xf32> to vector<8x8xbf16>
    %c0_1 = arith.constant 0 : index
    %c0_2 = arith.constant 0 : index
    %2 = vector.load %arg2[%c0_1, %c0_2] : memref<8x256xbf16, #tpu.memory_space<vmem>>, vector<8x256xbf16>
    %cst = arith.constant dense<0.000000e+00> : vector<8x256xf32>
    %3 = tpu.matmul %1, %2, %cst {dimension_numbers = #tpu.dot_dimension_numbers<[1], [0], [0], [1], [0, 0, 1, 1], [], []>} : vector<8x8xbf16>, vector<8x256xbf16>, vector<8x256xf32> -> vector<8x256xf32>
    %c0_3 = arith.constant 0 : index
    %c0_4 = arith.constant 0 : index
    %4 = vector.load %arg3[%c0_3, %c0_4] : memref<1x256xf32, #tpu.memory_space<vmem>>, vector<1x256xf32>
    %5 = vector.broadcast %4 : vector<1x256xf32> to vector<8x256xf32>
    %6 = arith.addf %3, %5 : vector<8x256xf32>
    %cst_5 = arith.constant 0.000000e+00 : f32
    %7 = vector.broadcast %cst_5 : f32 to vector<8x256xf32>
    %8 = arith.maximumf %6, %7 : vector<8x256xf32>
    %9 = arith.truncf %8 : vector<8x256xf32> to vector<8x256xbf16>
    %c0_6 = arith.constant 0 : index
    %c0_7 = arith.constant 0 : index
    %10 = vector.load %arg4[%c0_6, %c0_7] : memref<256x128xbf16, #tpu.memory_space<vmem>>, vector<256x128xbf16>
    %cst_8 = arith.constant dense<0.000000e+00> : vector<8x128xf32>
    %11 = tpu.matmul %9, %10, %cst_8 {dimension_numbers = #tpu.dot_dimension_numbers<[1], [0], [0], [1], [0, 0, 1, 1], [], []>} : vector<8x256xbf16>, vector<256x128xbf16>, vector<8x128xf32> -> vector<8x128xf32>
    %c0_9 = arith.constant 0 : index
    %c0_10 = arith.constant 0 : index
    %12 = vector.load %arg5[%c0_9, %c0_10] : memref<1x128xf32, #tpu.memory_space<vmem>>, vector<1x128xf32>
    %13 = vector.broadcast %12 : vector<1x128xf32> to vector<8x128xf32>
    %14 = arith.addf %11, %13 : vector<8x128xf32>
    %cst_11 = arith.constant 0.000000e+00 : f32
    %15 = vector.broadcast %cst_11 : f32 to vector<8x128xf32>
    %16 = arith.maximumf %14, %15 : vector<8x128xf32>
    %17 = arith.truncf %16 : vector<8x128xf32> to vector<8x128xbf16>
    %c0_12 = arith.constant 0 : index
    %c0_13 = arith.constant 0 : index
    %18 = vector.load %arg6[%c0_12, %c0_13] : memref<128x4xbf16, #tpu.memory_space<vmem>>, vector<128x4xbf16>
    %cst_14 = arith.constant dense<0.000000e+00> : vector<8x4xf32>
    %19 = tpu.matmul %17, %18, %cst_14 {dimension_numbers = #tpu.dot_dimension_numbers<[1], [0], [0], [1], [0, 0, 1, 1], [], []>} : vector<8x128xbf16>, vector<128x4xbf16>, vector<8x4xf32> -> vector<8x4xf32>
    %c0_15 = arith.constant 0 : index
    %c0_16 = arith.constant 0 : index
    %20 = vector.load %arg7[%c0_15, %c0_16] : memref<1x4xf32, #tpu.memory_space<vmem>>, vector<1x4xf32>
    %21 = vector.broadcast %20 : vector<1x4xf32> to vector<8x4xf32>
    %22 = arith.addf %19, %21 : vector<8x4xf32>
    %cst_17 = arith.constant dense<0xFF800000> : vector<8xf32>
    %23 = vector.multi_reduction <maximumf>, %22, %cst_17 [1] : vector<8x4xf32> to vector<8xf32>
    %24 = vector.shape_cast %23 : vector<8xf32> to vector<8x1xf32>
    %25 = vector.broadcast %24 : vector<8x1xf32> to vector<8x4xf32>
    %26 = arith.subf %22, %25 : vector<8x4xf32>
    %27 = math.exp %26 : vector<8x4xf32>
    %cst_18 = arith.constant dense<0.000000e+00> : vector<8xf32>
    %28 = vector.multi_reduction <add>, %27, %cst_18 [1] : vector<8x4xf32> to vector<8xf32>
    %29 = vector.shape_cast %28 : vector<8xf32> to vector<8x1xf32>
    %30 = tpu.reciprocal %29 : vector<8x1xf32> -> vector<8x1xf32>
    %31 = vector.broadcast %30 : vector<8x1xf32> to vector<8x4xf32>
    %32 = arith.mulf %27, %31 : vector<8x4xf32>
    %c0_19 = arith.constant 0 : index
    %c0_20 = arith.constant 0 : index
    %33 = vector.load %arg8[%c0_19, %c0_20] : memref<8x4xf32, #tpu.memory_space<vmem>>, vector<8x4xf32>
    tpu.vector_store %arg8[%c0_19, %c0_20], %32 {strides = array<i32>} : memref<8x4xf32, #tpu.memory_space<vmem>>, vector<8x4xf32>,
    return
  }
  func.func @transform_0(%arg0: i32) -> (i32, i32) {
    %c0_i32 = arith.constant 0 : i32
    %c0_i32_0 = arith.constant 0 : i32
    return %arg0, %c0_i32 : i32, i32
  }
  func.func @transform_1(%arg0: i32) -> (i32, i32) {
    %c0_i32 = arith.constant 0 : i32
    %c0_i32_0 = arith.constant 0 : i32
    %c0_i32_1 = arith.constant 0 : i32
    return %c0_i32, %c0_i32_0 : i32, i32
  }
  func.func @transform_2(%arg0: i32) -> (i32, i32) {
    %c0_i32 = arith.constant 0 : i32
    %c0_i32_0 = arith.constant 0 : i32
    %c0_i32_1 = arith.constant 0 : i32
    return %c0_i32, %c0_i32_0 : i32, i32
  }
  func.func @transform_3(%arg0: i32) -> (i32, i32) {
    %c0_i32 = arith.constant 0 : i32
    %c0_i32_0 = arith.constant 0 : i32
    %c0_i32_1 = arith.constant 0 : i32
    return %c0_i32, %c0_i32_0 : i32, i32
  }
  func.func @transform_4(%arg0: i32) -> (i32, i32) {
    %c0_i32 = arith.constant 0 : i32
    %c0_i32_0 = arith.constant 0 : i32
    %c0_i32_1 = arith.constant 0 : i32
    return %c0_i32, %c0_i32_0 : i32, i32
  }
  func.func @transform_5(%arg0: i32) -> (i32, i32) {
    %c0_i32 = arith.constant 0 : i32
    %c0_i32_0 = arith.constant 0 : i32
    %c0_i32_1 = arith.constant 0 : i32
    return %c0_i32, %c0_i32_0 : i32, i32
  }
  func.func @transform_6(%arg0: i32) -> (i32, i32) {
    %c0_i32 = arith.constant 0 : i32
    %c0_i32_0 = arith.constant 0 : i32
    %c0_i32_1 = arith.constant 0 : i32
    return %c0_i32, %c0_i32_0 : i32, i32
  }
  func.func @transform_7(%arg0: i32) -> (i32, i32) {
    %c0_i32 = arith.constant 0 : i32
    %c0_i32_0 = arith.constant 0 : i32
    return %arg0, %c0_i32 : i32, i32
  }
}

</mosaic_0001>

<bundles_post_ra>
// kernel: tpu_custom_call.1
= control target key start
LH: loop header
LB: loop body
LE: loop exit
PB: predicated region body
PF: predicated region fallthrough
CT: control target
= control target key end

     0   :  { %12 = vsyncpa [#allocation3], 0  ;;  %s564_s24 = smov [#allocation2]   ;;  %s667_s0 = inlined_call_operand.vmem [shape: f32[8,8], index: 0, kind: input, shape index: {}]   ;;  %s668_s1 = inlined_call_operand.vmem [shape: bf16[8,256], index: 1, kind: input, shape index: {}]   ;;  %s669_s2 = inlined_call_operand.vmem [shape: f32[1,256], index: 2, kind: input, shape index: {}]   ;;  %s670_s3 = inlined_call_operand.hbm [shape: bf16[256,128], index: 3, kind: input, shape index: {}]   ;;  %s671_s4 = inlined_call_operand.vmem [shape: f32[1,128], index: 4, kind: input, shape index: {}]   ;;  %s672_s5 = inlined_call_operand.vmem [shape: bf16[128,4], index: 5, kind: input, shape index: {}]   ;;  %s673_s6 = inlined_call_operand.vmem [shape: f32[1,4], index: 6, kind: input, shape index: {}]   ;;  %s674_s7 = inlined_call_operand.vmem [shape: f32[8,4], index: 7, kind: output, shape index: {}]  }
   0x1   :  { %s24_s25 = sshll.u32 %s564_s24, 4  ;;  %s540_s28 = scalar_lea.hbm %s670_s3, 2048  ;;  %s25_s25 = int_to_ptr.vmem [resolvable:$true] %s24_s25 }
   0x2   :  { %p541_p0 = scmp.ne.s32.totalorder %s670_s3, %s540_s28  ;;  %p544_p1 = scmp.lt.u32.totalorder %s540_s28, %s670_s3 }
   0x4   :  { %p546_p2 = pnand %p544_p1, %p541_p0 }
   0x6   :  { %549 = shalt.err (!%p546_p2)
}
   0x7   :  { %s550_s10 = scalar_lea.vmem %s25_s25, 2048  ;;  %p555_p4 = scmp.lt.s32.totalorder %s25_s25, %s25_s25 }
   0x8   :  { %p551_p3 = scmp.ne.s32.totalorder %s25_s25, %s550_s10  ;;  %p556_p5 = scmp.lt.s32.totalorder %s550_s10, %s550_s10 }
   0xa   :  { %p557_p6 = por %p556_p5, %p555_p4 }
   0xc   :  { %p558_p7 = pnand %p557_p6, %p551_p3 }
   0xe   :  { %561 = shalt.err (!%p558_p7)
}
   0xf   :  { %s565_s11 = smov 64   ;;  %s566_s12 = smov 4  }
  0x10   :  { %30 = dma.hbm_to_vmem [thread:$0]  %s670_s3, 2048, %s25_s25, [#allocation3], %s565_s11, %s565_s11, %s566_s12  }
  0x11   :  { %562 = dma.done.wait [#allocation3], 2048  }
  0x12   :  { %563 = vsyncadd [#allocation3], 4294965248  ;;  %v567_v0 = vmov 0   ;;  %v43_v1 = vld [vmem:[%s668_s1] sm:$0xff]  ;;  %vm65_vm0 = vcmask 1043456   ;;  %v514_v9 = vld [vmem:[#allocation2 + $0x48] sm:$0xff]   ;;  %v46_v30 = vlaneseq }
  0x13   :  { %104 = vmatprep.mubr.bf16.mxu0 %v567_v0  ;;  %v41_v2 = vld [vmem:[%s667_s0] sm:$0xff]  ;;  %v424_v3 = vcombine.high %v43_v1, %v43_v1  ;;  %v423_v4 = vcombine.low %v43_v1, %v43_v1  ;;  %vm61_vm1 = vcmask 64512   ;;  %v515_v10 = vld [vmem:[#allocation2 + $0x8] sm:$0xff]   ;;  %v516_v11 = vld [vmem:[#allocation2 + $0x50] sm:$0xff]   ;;  %v568_v24 = vmov 0.0  }
  0x14   :  { %v512_v5 = vld [vmem:[#allocation2 + $0x40] sm:$0xff]   ;;  %v42_v8 = vpack.c.bf16 %v41_v2, %v41_v2  ;;  %v517_v12 = vld [vmem:[#allocation2 + $0x10] sm:$0xff]   ;;  %v518_v13 = vld [vmem:[#allocation2 + $0x58] sm:$0xff]   ;;  %v47_v31 = vshrl.u32 %v46_v30, 7  ;;  %vm569_vm2 = vmmov 0   ;;  %vm405_vm3 = vcmask 31744  }
  0x15   :  { %v513_v6 = vld [vmem:[#allocation2] sm:$0xff]   ;;  %425 = vmatprep.subr.msk.bf16.mxu0 %vm65_vm0, %v424_v3  ;;  %v67_v7 = vsel %vm65_vm0, %v423_v4, 0  ;;  %453 = vmatprep.subr.bf16.mxu1 %v512_v5  ;;  %v519_v14 = vld [vmem:[#allocation2 + $0x18] sm:$0xff]   ;;  %v522_v17 = vld [vmem:[#allocation2 + $0x68] sm:$0xff]  }
  0x16   :  { %73 = vmatpush1.bf16.msra.mxu0 %v67_v7  ;;  %454 = vmatpush3.bf16.msra.mxu1 %v513_v6  ;;  %v520_v15 = vld [vmem:[#allocation2 + $0x60] sm:$0xff]   ;;  %v523_v18 = vld [vmem:[#allocation2 + $0x28] sm:$0xff]   ;;  %v524_v19 = vld [vmem:[#allocation2 + $0x70] sm:$0xff]   ;;  %v48_v32 = vsub.s32 0, %v47_v31  ;;  %v52_v34 = vsub.s32 1, %v47_v31 }
  0x17   :  { %455 = vmatprep.subr.bf16.mxu1 %v514_v9  ;;  %v521_v16 = vld [vmem:[#allocation2 + $0x20] sm:$0xff]   ;;  %v525_v20 = vld [vmem:[#allocation2 + $0x30] sm:$0xff]   ;;  %v526_v21 = vld [vmem:[#allocation2 + $0x78] sm:$0xff]   ;;  %484 = vmatprep.subr.bf16.mxu0 %v568_v24 }
  0x18   :  { %v527_v22 = vld [vmem:[#allocation2 + $0x38] sm:$0xff]   ;;  %v528_v23 = vld [vmem:[%s672_s5] sm:$0xff]   ;;  %v529_v25 = vld [vmem:[%s672_s5 + $0x8] sm:$0xff]  }
  0x19   :  { %426 = vmatmul.mubr.msk.bf16.vlgmr.msra.gmra.mrb[0].mxu0 %vm61_vm1, %v42_v8  ;;  %v530_v26 = vld [vmem:[%s672_s5 + $0x10] sm:$0xff]   ;;  %v531_v27 = vld [vmem:[%s672_s5 + $0x18] sm:$0xff]   ;;  %v532_v28 = vld [vmem:[%s672_s5 + $0x20] sm:$0xff]  }
  0x1a   :  { %456 = vmatpush3.bf16.msra.mxu1 %v515_v10  ;;  %485 = vmatpush3.bf16.msra.mxu0 %v528_v23  ;;  %v533_v29 = vld [vmem:[%s672_s5 + $0x28] sm:$0xff]   ;;  %v44_v33 = vld [vmem:[%s669_s2] sm:$0x3]  ;;  %v534_v47 = vld [vmem:[%s672_s5 + $0x30] sm:$0xff]  }
  0x1b   :  { %457 = vmatprep.subr.bf16.mxu1 %v516_v11  ;;  %486 = vmatprep.subr.bf16.mxu0 %v568_v24  ;;  %v49_v35 = vrot.slane %v44_v33, %v48_v32  ;;  %v53_v36 = vrot.slane %v44_v33, %v52_v34  ;;  %v535_v48 = vld [vmem:[%s672_s5 + $0x38] sm:$0xff]   ;;  %v427_v50 = vld [vmem:[%s671_s4] ss:$0 sm:$0xff] }
  0x1c   :  { %500 = vmatprep.mubr.msk.bf16.mxu0 %vm569_vm2, %v568_v24  ;;  %v444_v58 = vld [vmem:[%s673_s6] ss:$0 sm:$0xff] }
  0x1e   :  { %458 = vmatpush3.bf16.msra.mxu1 %v517_v12  ;;  %487 = vmatpush3.bf16.msra.mxu0 %v529_v25 }
  0x1f   :  { %459 = vmatprep.subr.bf16.mxu1 %v518_v13  ;;  %488 = vmatprep.subr.bf16.mxu0 %v568_v24 }
  0x22   :  { %460 = vmatpush3.bf16.msra.mxu1 %v519_v14  ;;  %489 = vmatpush3.bf16.msra.mxu0 %v530_v26 }
  0x23   :  { %461 = vmatprep.subr.bf16.mxu1 %v520_v15  ;;  %490 = vmatprep.subr.bf16.mxu0 %v568_v24 }
  0x26   :  { %462 = vmatpush3.bf16.msra.mxu1 %v521_v16  ;;  %491 = vmatpush3.bf16.msra.mxu0 %v531_v27 }
  0x27   :  { %463 = vmatprep.subr.bf16.mxu1 %v522_v17  ;;  %492 = vmatprep.subr.bf16.mxu0 %v568_v24 }
  0x2a   :  { %464 = vmatpush3.bf16.msra.mxu1 %v523_v18  ;;  %493 = vmatpush3.bf16.msra.mxu0 %v532_v28 }
  0x2b   :  { %465 = vmatprep.subr.bf16.mxu1 %v524_v19  ;;  %494 = vmatprep.subr.bf16.mxu0 %v568_v24 }
  0x2e   :  { %466 = vmatpush3.bf16.msra.mxu1 %v525_v20  ;;  %495 = vmatpush3.bf16.msra.mxu0 %v533_v29 }
  0x2f   :  { %467 = vmatprep.subr.bf16.mxu1 %v526_v21  ;;  %496 = vmatprep.subr.bf16.mxu0 %v568_v24 }
  0x32   :  { %468 = vmatpush3.bf16.msra.mxu1 %v527_v22  ;;  %497 = vmatpush3.bf16.msra.mxu0 %v534_v47 }
  0x33   :  { %498 = vmatprep.subr.bf16.mxu0 %v568_v24 }
  0x36   :  { %499 = vmatpush3.bf16.msra.mxu0 %v535_v48 }
  0xec   :  { %v106_v37 = vpop.f32.mrb[0].mxu0 }
  0xed   :  { %v107_v38 = vadd.f32 %v106_v37, %v49_v35  ;;  %v108_v39 = vpop.f32.mrb[1].mxu0 }
  0xee   :  { %v109_v40 = vadd.f32 %v108_v39, %v53_v36  ;;  %v110_v41 = vpop.f32.mrb[2].mxu0 }
  0xef   :  { %v113_v42 = vmax.f32 %v107_v38, 0.0  ;;  %v111_v43 = vpop.f32.mrb[3].mxu0 }
  0xf0   :  { %v114_v44 = vmax.f32 %v109_v40, 0.0 }
  0xf1   :  { %v115_v46 = vpack.c.bf16 %v113_v42, %v113_v42 }
  0xf2   :  { %v116_v45 = vpack.c.bf16 %v114_v44, %v114_v44 }
  0xf4   :  { %284 = vmatprep.mubr.bf16.mxu1 %v116_v45 }
  0xf5   :  { %285 = vmatmul.mubr.bf16.vlgmr.msra.gmra.mrb[0].mxu1 %v115_v46 }
 0x1c8   :  { %v469_v49 = vpop.f32.mrb[0].mxu1 }
 0x1c9   :  { %v470_v51 = vpop.f32.mrb[1].mxu1 }
 0x1ca   :  { %v471_v52 = vadd.f32 %v470_v51, %v469_v49  ;;  %v472_v53 = vpop.f32.mrb[2].mxu1 }
 0x1cb   :  { %v473_v54 = vpop.f32.mrb[3].mxu1 }
 0x1cc   :  { %v287_v55 = vadd.f32 %v471_v52, %v427_v50 }
 0x1ce   :  { %v292_v56 = vmax.f32 %v287_v55, 0.0 }
 0x1d0   :  { %v293_v57 = vpack.c.bf16 %v292_v56, %v292_v56 }
 0x1d2   :  { %501 = vmatmul.mubr.bf16.vlgmr.msra.gmra.mrb[4].mxu0 %v293_v57 }
 0x2a5   :  { %v399_v59 = vpop.f32.mrb[4].mxu0 }
 0x2a6   :  { %v400_v60 = vadd.f32 %v444_v58, %v399_v59  ;;  %v502_v61 = vpop.f32.mrb[5].mxu0 }
 0x2a7   :  { %v402_v62 = vpop.f32.mrb[6].mxu0 }
 0x2a8   :  { %v503_v63 = vpop.f32.mrb[7].mxu0  ;;  %v406_v0 = vsel %vm405_vm3, %v400_v60, -inf }
 0x2a9   :  { %407 = vmax.xlane.f32.xlu0 %v406_v0 }
 0x336   :  { %v408_v1 = vpop.xlane.xlu0 %407 }
 0x337   :  { %v409_v2 = vsub.f32 %v400_v60, %v408_v1 }
 0x339   :  { %v410_v3 = vmul.f32 1.442695, %v409_v2 }
 0x33b   :  { %536 = vpow2.f32 %v410_v3 }
 0x345   :  { %v537_v4 = vpop.eup %536 }
 0x346   :  { %v412_v5 = vsel %vm405_vm3, %v537_v4, 0.0 }
 0x347   :  { %413 = vadd.xlane.f32.xlu0 %v412_v5 }
 0x3d4   :  { %v414_v6 = vpop.xlane.xlu0 %413 }
 0x3d5   :  { %538 = vrcp.f32 %v414_v6 }
 0x3df   :  { %v539_v7 = vpop.eup %538 }
 0x3e0   :  { %v416_v8 = vmul.f32 %v539_v7, %v537_v4 }
 0x3e2   :  { %417 = vst.msk [vmem:[%s674_s7] sm:$0xff] %vm405_vm3, %v416_v8 }
 0x3e3   :  { %422 = vsyncpa [#allocation3], 1 }

</bundles_post_ra>
